<compile_context>
chip_gen: v6e
topology: v6e:2x2x1
jax: 0.10.0
libtpu: 0.0.40
codegen_flags: <defaults>
</compile_context>

<pallas_src>
import functools

import jax
import jax.numpy as jnp
from jax.experimental import pallas as pl
from jax.experimental.pallas import tpu as pltpu

_LANE = 128
_SUBLANE = 8
_CHUNK = 256  # rows per in-kernel sub-chunk (MXU/EUP software pipelining)


def _round_up(n, m):
    return ((n + m - 1) // m) * m


def _pad2d(a, rows, cols):
    return jnp.pad(a, ((0, rows - a.shape[0]), (0, cols - a.shape[1])))


def _mlp_kernel(x_ref, w1_ref, b1_ref, w2_ref, b2_ref, w3_ref, b3_ref, o_ref):
    # Weights (bf16) and biases (f32) are tiny; load once per grid step.
    w1 = w1_ref[...]
    w2 = w2_ref[...]
    w3 = w3_ref[...]
    b1 = b1_ref[...]
    b2 = b2_ref[...]
    b3 = b3_ref[...]

    tm = x_ref.shape[0]
    # Static (trace-time unrolled) sub-chunk loop: independent chunks let the scheduler
    # overlap EUP tanh pushes of one chunk with MXU pushes of the next.
    for r0 in range(0, tm, _CHUNK):
        rows = min(_CHUNK, tm - r0)
        xs = x_ref[r0:r0 + rows, :].astype(jnp.bfloat16)
        # Layer 1: Linear + Tanh (bf16 MXU operands, f32 accumulate; bias/tanh f32).
        h1 = jnp.dot(xs, w1, preferred_element_type=jnp.float32)
        h1 = jnp.tanh(h1 + b1)
        # Layer 2: Linear + Tanh.
        h2 = jnp.dot(h1.astype(jnp.bfloat16), w2, preferred_element_type=jnp.float32)
        h2 = jnp.tanh(h2 + b2)
        # Layer 3: Linear (no activation); narrow (out_dim-lane) store.
        out = jnp.dot(h2.astype(jnp.bfloat16), w3, preferred_element_type=jnp.float32)
        o_ref[r0:r0 + rows, :] = (out + b3).astype(o_ref.dtype)


def pack_params(params):
    """One-time (non-jitted-per-call) packing: pad hidden feature axes to 128 lanes
    (exact: tanh(0)=0 and zero rows/cols are inert), pad w3 only along its contraction
    axis, cast MXU operands (weights) to bf16, keep biases in f32."""
    w1, b1 = params["w1"], params["b1"]
    w2, b2 = params["w2"], params["b2"]
    w3, b3 = params["w3"], params["b3"]
    in_dim, mid = w1.shape
    out_dim = w3.shape[1]
    mid_p = _round_up(mid, _LANE)

    w1p = _pad2d(w1, in_dim, mid_p).astype(jnp.bfloat16)
    b1p = _pad2d(b1, 1, mid_p).astype(jnp.float32)
    w2p = _pad2d(w2, mid_p, mid_p).astype(jnp.bfloat16)
    b2p = _pad2d(b2, 1, mid_p).astype(jnp.float32)
    # Output feature axis is NOT lane-padded; only contraction rows are padded.
    w3p = _pad2d(w3, mid_p, out_dim).astype(jnp.bfloat16)
    b3p = b3.astype(jnp.float32)
    return {"w1": w1p, "b1": b1p, "w2": w2p, "b2": b2p, "w3": w3p, "b3": b3p}


@functools.partial(jax.jit, static_argnames=("tm",))
def multilayer_forward(x, packed, *, tm=1024):
    """x: (B, input_layer) f32; packed: output of pack_params (bf16 weights, f32 biases)."""
    w1, b1 = packed["w1"], packed["b1"]
    w2, b2 = packed["w2"], packed["b2"]
    w3, b3 = packed["w3"], packed["b3"]
    B, in_dim = x.shape
    mid_p = w1.shape[1]
    out_dim = w3.shape[1]

    # Batch tile: fat tiles to amortize per-step overhead, but keep >= 2 grid steps when
    # the batch allows so v7x shards the "parallel" batch axis across its 2 TensorCores.
    if B <= _SUBLANE:
        TM = _SUBLANE
    else:
        TM = max(_SUBLANE, min(tm, _round_up((B + 1) // 2, _SUBLANE)))
    B_pad = _round_up(B, TM)
    xp = x if B_pad == B else jnp.pad(x, ((0, B_pad - B), (0, 0)))

    grid = (B_pad // TM,)

    flops = 2 * B_pad * (in_dim * mid_p + mid_p * mid_p + mid_p * out_dim)
    transcendentals = 2 * B_pad * mid_p  # two tanh layers
    bytes_accessed = (4 * xp.size
                      + 2 * (w1.size + w2.size + w3.size)      # bf16 weights
                      + 4 * (b1.size + b2.size + b3.size)      # f32 biases
                      + 4 * B_pad * out_dim)                   # f32 output

    out = pl.pallas_call(
        _mlp_kernel,
        out_shape=jax.ShapeDtypeStruct((B_pad, out_dim), jnp.float32),
        grid=grid,
        in_specs=[
            # x: blocked along the batch axis, double-buffered across grid steps.
            pl.BlockSpec((TM, in_dim), lambda i: (i, 0)),
            # Weights / biases: constant block index -> fetched once, VMEM-resident.
            pl.BlockSpec((in_dim, mid_p), lambda i: (0, 0)),
            pl.BlockSpec((1, mid_p), lambda i: (0, 0)),
            pl.BlockSpec((mid_p, mid_p), lambda i: (0, 0)),
            pl.BlockSpec((1, mid_p), lambda i: (0, 0)),
            pl.BlockSpec((mid_p, out_dim), lambda i: (0, 0)),
            pl.BlockSpec((1, out_dim), lambda i: (0, 0)),
        ],
        # Narrow (out_dim-wide) output block: last block dim == full array last dim.
        out_specs=pl.BlockSpec((TM, out_dim), lambda i: (i, 0)),
        compiler_params=pltpu.CompilerParams(
            dimension_semantics=("parallel",)),  # shard batch grid across v7x's 2 TCs
        cost_estimate=pl.CostEstimate(
            flops=flops,
            transcendentals=transcendentals,
            bytes_accessed=bytes_accessed),
    )(xp, w1, b1, w2, b2, w3, b3)

    return out if B_pad == B else out[:B]


def init_params(key, input_layer, middle_layer, output_layer):
    """Deterministic init mirroring nn.Linear's U(-1/sqrt(fan_in), 1/sqrt(fan_in)).
    Weights are stored as (in, out) = PyTorch weight.T."""
    keys = jax.random.split(key, 6)

    def linear(kw, kb, fan_in, fan_out):
        bound = 1.0 / jnp.sqrt(jnp.float32(fan_in))
        w = jax.random.uniform(kw, (fan_in, fan_out), jnp.float32, -bound, bound)
        b = jax.random.uniform(kb, (1, fan_out), jnp.float32, -bound, bound)
        return w, b

    w1, b1 = linear(keys[0], keys[1], input_layer, middle_layer)
    w2, b2 = linear(keys[2], keys[3], middle_layer, middle_layer)
    w3, b3 = linear(keys[4], keys[5], middle_layer, output_layer)
    return {"w1": w1, "b1": b1, "w2": w2, "b2": b2, "w3": w3, "b3": b3}


if __name__ == "__main__":
    input_layer, middle_layer, output_layer = 32, 64, 16
    batch = 8

    key = jax.random.PRNGKey(0)
    k_x, k_p = jax.random.split(key)
    x = jax.random.normal(k_x, (batch, input_layer), jnp.float32)
    params = init_params(k_p, input_layer, middle_layer, output_layer)
    packed = pack_params(params)

    out = multilayer_forward(x, packed)
    out = jax.block_until_ready(out)

    # Pure-JAX f32 reference (bf16 MXU operands -> tolerance loosened vs. pure f32).
    h = jnp.tanh(x @ params["w1"] + params["b1"])
    h = jnp.tanh(h @ params["w2"] + params["b2"])
    ref = h @ params["w3"] + params["b3"]
    assert out.shape == (batch, output_layer)
    assert jnp.allclose(out, ref, atol=2e-2, rtol=2e-2), float(jnp.max(jnp.abs(out - ref)))

    print("KERNEL_OK")
</pallas_src>

<mosaic_0001>
module attributes {stable_mosaic.version = 11 : i64} {
  func.func @_mlp_kernel(%arg0: i32, %arg1: memref<8x32xf32, #tpu.memory_space<vmem>>, %arg2: memref<32x128xbf16, #tpu.memory_space<vmem>>, %arg3: memref<1x128xf32, #tpu.memory_space<vmem>>, %arg4: memref<128x128xbf16, #tpu.memory_space<vmem>>, %arg5: memref<1x128xf32, #tpu.memory_space<vmem>>, %arg6: memref<128x16xbf16, #tpu.memory_space<vmem>>, %arg7: memref<1x16xf32, #tpu.memory_space<vmem>>, %arg8: memref<8x16xf32, #tpu.memory_space<vmem>>) attributes {dimension_semantics = [#tpu.dimension_semantics<parallel>], iteration_bounds = array<i64: 1>, scalar_prefetch = 0 : i64, scratch_operands = 0 : i64, tpu.core_type = #tpu.core_type<tc>, window_params = [{transform_indices = @transform_0, window_bounds = array<i64: 8, 32>}, {pipeline_mode = #tpu.pipeline_mode<synchronous>, transform_indices = @transform_1, window_bounds = array<i64: 32, 128>}, {pipeline_mode = #tpu.pipeline_mode<synchronous>, transform_indices = @transform_2, window_bounds = array<i64: 1, 128>}, {pipeline_mode = #tpu.pipeline_mode<synchronous>, transform_indices = @transform_3, window_bounds = array<i64: 128, 128>}, {pipeline_mode = #tpu.pipeline_mode<synchronous>, transform_indices = @transform_4, window_bounds = array<i64: 1, 128>}, {pipeline_mode = #tpu.pipeline_mode<synchronous>, transform_indices = @transform_5, window_bounds = array<i64: 128, 16>}, {pipeline_mode = #tpu.pipeline_mode<synchronous>, transform_indices = @transform_6, window_bounds = array<i64: 1, 16>}, {transform_indices = @transform_7, window_bounds = array<i64: 8, 16>}]} {
    %c0 = arith.constant 0 : index
    %c0_0 = arith.constant 0 : index
    %0 = vector.load %arg2[%c0, %c0_0] : memref<32x128xbf16, #tpu.memory_space<vmem>>, vector<32x128xbf16>
    %c0_1 = arith.constant 0 : index
    %c0_2 = arith.constant 0 : index
    %1 = vector.load %arg4[%c0_1, %c0_2] : memref<128x128xbf16, #tpu.memory_space<vmem>>, vector<128x128xbf16>
    %c0_3 = arith.constant 0 : index
    %c0_4 = arith.constant 0 : index
    %2 = vector.load %arg6[%c0_3, %c0_4] : memref<128x16xbf16, #tpu.memory_space<vmem>>, vector<128x16xbf16>
    %c0_5 = arith.constant 0 : index
    %c0_6 = arith.constant 0 : index
    %3 = vector.load %arg3[%c0_5, %c0_6] : memref<1x128xf32, #tpu.memory_space<vmem>>, vector<1x128xf32>
    %c0_7 = arith.constant 0 : index
    %c0_8 = arith.constant 0 : index
    %4 = vector.load %arg5[%c0_7, %c0_8] : memref<1x128xf32, #tpu.memory_space<vmem>>, vector<1x128xf32>
    %c0_9 = arith.constant 0 : index
    %c0_10 = arith.constant 0 : index
    %5 = vector.load %arg7[%c0_9, %c0_10] : memref<1x16xf32, #tpu.memory_space<vmem>>, vector<1x16xf32>
    %c0_11 = arith.constant 0 : index
    %c0_12 = arith.constant 0 : index
    %6 = vector.load %arg1[%c0_11, %c0_12] : memref<8x32xf32, #tpu.memory_space<vmem>>, vector<8x32xf32>
    %7 = arith.truncf %6 : vector<8x32xf32> to vector<8x32xbf16>
    %cst = arith.constant dense<0.000000e+00> : vector<8x128xf32>
    %8 = tpu.matmul %7, %0, %cst {dimension_numbers = #tpu.dot_dimension_numbers<[1], [0], [0], [1], [0, 0, 1, 1], [], []>} : vector<8x32xbf16>, vector<32x128xbf16>, vector<8x128xf32> -> vector<8x128xf32>
    %9 = vector.broadcast %3 : vector<1x128xf32> to vector<8x128xf32>
    %10 = arith.addf %8, %9 : vector<8x128xf32>
    %11 = math.tanh %10 : vector<8x128xf32>
    %12 = arith.truncf %11 : vector<8x128xf32> to vector<8x128xbf16>
    %cst_13 = arith.constant dense<0.000000e+00> : vector<8x128xf32>
    %13 = tpu.matmul %12, %1, %cst_13 {dimension_numbers = #tpu.dot_dimension_numbers<[1], [0], [0], [1], [0, 0, 1, 1], [], []>} : vector<8x128xbf16>, vector<128x128xbf16>, vector<8x128xf32> -> vector<8x128xf32>
    %14 = vector.broadcast %4 : vector<1x128xf32> to vector<8x128xf32>
    %15 = arith.addf %13, %14 : vector<8x128xf32>
    %16 = math.tanh %15 : vector<8x128xf32>
    %17 = arith.truncf %16 : vector<8x128xf32> to vector<8x128xbf16>
    %cst_14 = arith.constant dense<0.000000e+00> : vector<8x16xf32>
    %18 = tpu.matmul %17, %2, %cst_14 {dimension_numbers = #tpu.dot_dimension_numbers<[1], [0], [0], [1], [0, 0, 1, 1], [], []>} : vector<8x128xbf16>, vector<128x16xbf16>, vector<8x16xf32> -> vector<8x16xf32>
    %19 = vector.broadcast %5 : vector<1x16xf32> to vector<8x16xf32>
    %20 = arith.addf %18, %19 : vector<8x16xf32>
    %c0_15 = arith.constant 0 : index
    %c0_16 = arith.constant 0 : index
    %21 = vector.load %arg8[%c0_15, %c0_16] : memref<8x16xf32, #tpu.memory_space<vmem>>, vector<8x16xf32>
    tpu.vector_store %arg8[%c0_15, %c0_16], %20 {strides = array<i32>} : memref<8x16xf32, #tpu.memory_space<vmem>>, vector<8x16xf32>,
    return
  }
  func.func @transform_0(%arg0: i32) -> (i32, i32) {
    %c0_i32 = arith.constant 0 : i32
    %c0_i32_0 = arith.constant 0 : i32
    return %arg0, %c0_i32 : i32, i32
  }
  func.func @transform_1(%arg0: i32) -> (i32, i32) {
    %c0_i32 = arith.constant 0 : i32
    %c0_i32_0 = arith.constant 0 : i32
    %c0_i32_1 = arith.constant 0 : i32
    return %c0_i32, %c0_i32_0 : i32, i32
  }
  func.func @transform_2(%arg0: i32) -> (i32, i32) {
    %c0_i32 = arith.constant 0 : i32
    %c0_i32_0 = arith.constant 0 : i32
    %c0_i32_1 = arith.constant 0 : i32
    return %c0_i32, %c0_i32_0 : i32, i32
  }
  func.func @transform_3(%arg0: i32) -> (i32, i32) {
    %c0_i32 = arith.constant 0 : i32
    %c0_i32_0 = arith.constant 0 : i32
    %c0_i32_1 = arith.constant 0 : i32
    return %c0_i32, %c0_i32_0 : i32, i32
  }
  func.func @transform_4(%arg0: i32) -> (i32, i32) {
    %c0_i32 = arith.constant 0 : i32
    %c0_i32_0 = arith.constant 0 : i32
    %c0_i32_1 = arith.constant 0 : i32
    return %c0_i32, %c0_i32_0 : i32, i32
  }
  func.func @transform_5(%arg0: i32) -> (i32, i32) {
    %c0_i32 = arith.constant 0 : i32
    %c0_i32_0 = arith.constant 0 : i32
    %c0_i32_1 = arith.constant 0 : i32
    return %c0_i32, %c0_i32_0 : i32, i32
  }
  func.func @transform_6(%arg0: i32) -> (i32, i32) {
    %c0_i32 = arith.constant 0 : i32
    %c0_i32_0 = arith.constant 0 : i32
    %c0_i32_1 = arith.constant 0 : i32
    return %c0_i32, %c0_i32_0 : i32, i32
  }
  func.func @transform_7(%arg0: i32) -> (i32, i32) {
    %c0_i32 = arith.constant 0 : i32
    %c0_i32_0 = arith.constant 0 : i32
    return %arg0, %c0_i32 : i32, i32
  }
}

</mosaic_0001>

<bundles_post_ra>
// kernel: multilayer_forward.1
= control target key start
LH: loop header
LB: loop body
LE: loop exit
PB: predicated region body
PF: predicated region fallthrough
CT: control target
= control target key end

     0   :  { %12 = vsyncpa [#allocation3], 0  ;;  %s720_s0 = inlined_call_operand.hbm [shape: f32[8,32], index: 0, kind: input, shape index: {}]   ;;  %s721_s1 = inlined_call_operand.vmem [shape: bf16[32,128], index: 1, kind: input, shape index: {}]   ;;  %s722_s2 = inlined_call_operand.vmem [shape: f32[1,128], index: 2, kind: input, shape index: {}]   ;;  %s723_s3 = inlined_call_operand.vmem [shape: bf16[128,128], index: 3, kind: input, shape index: {}]   ;;  %s724_s4 = inlined_call_operand.hbm [shape: f32[1,128], index: 4, kind: input, shape index: {}]   ;;  %s725_s5 = inlined_call_operand.vmem [shape: bf16[128,16], index: 5, kind: input, shape index: {}]   ;;  %s726_s6 = inlined_call_operand.hbm [shape: f32[1,16], index: 6, kind: input, shape index: {}]   ;;  %s727_s7 = inlined_call_operand.hbm [shape: f32[8,16], index: 7, kind: output, shape index: {}]  }
   0x1   :  { %13 = vsyncpa [#allocation6], 0 }
   0x2   :  { %14 = vsyncpa [#allocation4], 0  ;;  %s581_s24 = smov [#allocation5]   ;;  %s582_s26 = smov [#allocation2]  }
   0x3   :  { %s37_s25 = sshll.u32 %s581_s24, 4  ;;  %s21_s27 = sshll.u32 %s582_s26, 4  ;;  %s38_s25 = int_to_ptr.vmem [resolvable:$true] %s37_s25  ;;  %s22_s27 = int_to_ptr.vmem [resolvable:$true] %s21_s27 }
   0x4   :  { %s503_s28 = scalar_lea.vmem %s38_s25, 16  ;;  %s507_s29 = scalar_lea.vmem %s38_s25, 32 }
   0x5   :  { %p504_p0 = scmp.ne.s32.totalorder %s38_s25, %s503_s28  ;;  %p508_p1 = scmp.lt.s32.totalorder %s38_s25, %s38_s25 }
   0x6   :  { %p509_p2 = scmp.lt.s32.totalorder %s507_s29, %s503_s28 }
   0x8   :  { %p510_p3 = por %p509_p2, %p508_p1 }
   0xa   :  { %p511_p4 = pnand %p510_p3, %p504_p0 }
   0xc   :  { %514 = shalt.err (!%p511_p4)
}
   0xd   :  { %40 = dma.hbm_to_vmem [thread:$0]  %s724_s4, 16, %s38_s25, [#allocation6]  }
   0xe   :  { %s523_s9 = scalar_lea.vmem %s22_s27, 128  ;;  %p528_p6 = scmp.lt.s32.totalorder %s22_s27, %s22_s27 }
   0xf   :  { %p524_p5 = scmp.ne.s32.totalorder %s22_s27, %s523_s9  ;;  %p529_p7 = scmp.lt.s32.totalorder %s523_s9, %s523_s9 }
  0x11   :  { %p530_p8 = por %p529_p7, %p528_p6 }
  0x13   :  { %p531_p9 = pnand %p530_p8, %p524_p5 }
  0x15   :  { %534 = shalt.err (!%p531_p9)
}
  0x16   :  { %24 = dma.hbm_to_vmem [thread:$0]  %s720_s0, 128, %s22_s27, [#allocation3]  }
  0x17   :  { %s583_s12 = smov [#allocation7]  }
  0x18   :  { %s49_s13 = sshll.u32 %s583_s12, 4  ;;  %s50_s13 = int_to_ptr.vmem [resolvable:$true] %s49_s13 }
  0x19   :  { %s543_s14 = scalar_lea.vmem %s50_s13, 16  ;;  %s547_s15 = scalar_lea.vmem %s50_s13, 32 }
  0x1a   :  { %p544_p10 = scmp.ne.s32.totalorder %s50_s13, %s543_s14  ;;  %p548_p11 = scmp.lt.s32.totalorder %s50_s13, %s50_s13 }
  0x1b   :  { %p549_p12 = scmp.lt.s32.totalorder %s547_s15, %s543_s14 }
  0x1d   :  { %p550_p13 = por %p549_p12, %p548_p11 }
  0x1f   :  { %p551_p0 = pnand %p550_p13, %p544_p10 }
  0x21   :  { %554 = shalt.err (!%p551_p0)
}
  0x22   :  { %52 = dma.hbm_to_vmem [thread:$0]  %s726_s6, 16, %s50_s13, [#allocation6]  }
  0x23   :  { %575 = dma.done.wait [#allocation3], 128  }
  0x24   :  { %576 = vsyncadd [#allocation3], 4294967168 }
  0x25   :  { %577 = dma.done.wait [#allocation6], 32  }
  0x26   :  { %578 = vsyncadd [#allocation6], 4294967264  ;;  %v584_v0 = vmov 0.0   ;;  %vm585_vm0 = vmmov 0   ;;  %v473_v1 = vld [vmem:[%s721_s1 + $0x8] sm:$0xff]   ;;  %v474_v2 = vld [vmem:[%s721_s1] sm:$0xff]  }
  0x27   :  { %419 = vmatprep.subr.bf16.mxu0 %v584_v0  ;;  %423 = vmatprep.mubr.msk.bf16.mxu0 %vm585_vm0, %v584_v0  ;;  %v102_v3 = vld [vmem:[#allocation2] sm:$0xff]  ;;  %v475_v4 = vld [vmem:[%s723_s3 + $0x38] sm:$0xff]   ;;  %vm122_vm1 = vcmask 261120   ;;  %v476_v6 = vld [vmem:[%s723_s3 + $0x30] sm:$0xff]   ;;  %s586_s1 = smov [#allocation8]   ;;  %vm358_vm2 = vcmask 130048  }
  0x28   :  { %427 = vmatprep.subr.bf16.mxu1 %v584_v0  ;;  %443 = vmatprep.mubr.msk.bf16.mxu1 %vm585_vm0, %v584_v0  ;;  %v103_v5 = vpack.c.bf16 %v102_v3, %v102_v3  ;;  %v477_v7 = vld [vmem:[%s723_s3 + $0x28] sm:$0xff]   ;;  %v478_v8 = vld [vmem:[%s723_s3 + $0x20] sm:$0xff]   ;;  %v479_v9 = vld [vmem:[%s723_s3 + $0x18] sm:$0xff]   ;;  %s366_s24 = sshll.u32 %s586_s1, 4  ;;  %s367_s24 = int_to_ptr.vmem [resolvable:$true] %s366_s24 }
  0x29   :  { %420 = vmatpush3.bf16.msra.mxu0 %v473_v1  ;;  %428 = vmatpush3.bf16.msra.mxu1 %v475_v4  ;;  %v480_v10 = vld [vmem:[%s723_s3 + $0x10] sm:$0xff]   ;;  %v481_v11 = vld [vmem:[%s723_s3 + $0x8] sm:$0xff]   ;;  %v482_v12 = vld [vmem:[%s723_s3] sm:$0xff]   ;;  %p560_p2 = scmp.lt.s32.totalorder %s367_s24, %s367_s24 }
  0x2a   :  { %421 = vmatprep.subr.bf16.mxu0 %v584_v0  ;;  %429 = vmatprep.subr.bf16.mxu1 %v584_v0  ;;  %v483_v13 = vld [vmem:[%s725_s5 + $0x38] sm:$0xff]   ;;  %v484_v14 = vld [vmem:[%s725_s5 + $0x30] sm:$0xff]   ;;  %v485_v15 = vld [vmem:[%s725_s5 + $0x28] sm:$0xff]  }
  0x2b   :  { %v376_v16 = vld [vmem:[%s722_s2] ss:$0 sm:$0xff]  ;;  %v487_v25 = vld [vmem:[%s725_s5 + $0x18] sm:$0xff]   ;;  %v488_v26 = vld [vmem:[%s725_s5 + $0x10] sm:$0xff]  }
  0x2c   :  { %v486_v24 = vld [vmem:[%s725_s5 + $0x20] sm:$0xff]   ;;  %v489_v27 = vld [vmem:[%s725_s5 + $0x8] sm:$0xff]  }
  0x2d   :  { %422 = vmatpush3.bf16.msra.mxu0 %v474_v2  ;;  %430 = vmatpush3.bf16.msra.mxu1 %v476_v6  ;;  %v490_v28 = vld [vmem:[%s725_s5] sm:$0xff]   ;;  %v380_v29 = vld [vmem:[#allocation5] ss:$0 sm:$0xff]  ;;  %v389_v37 = vld [vmem:[#allocation7] ss:$0 sm:$0xff]  ;;  %s555_s5 = scalar_lea.vmem %s367_s24, 128 }
  0x2e   :  { %447 = vmatprep.subr.bf16.mxu0 %v584_v0  ;;  %431 = vmatprep.subr.bf16.mxu1 %v584_v0  ;;  %p556_p1 = scmp.ne.s32.totalorder %s367_s24, %s555_s5  ;;  %p561_p3 = scmp.lt.s32.totalorder %s555_s5, %s555_s5 }
  0x30   :  { %424 = vmatmul.mubr.msk.bf16.vlgmr.msra.gmra.mxu0 %vm122_vm1, %v103_v5  ;;  %p562_p4 = por %p561_p3, %p560_p2 }
  0x31   :  { %463 = vmatprep.mubr.msk.bf16.mxu0 %vm585_vm0, %v584_v0  ;;  %432 = vmatpush3.bf16.msra.mxu1 %v477_v7 }
  0x32   :  { %433 = vmatprep.subr.bf16.mxu1 %v584_v0  ;;  %448 = vmatpush3.bf16.msra.mxu0 %v483_v13  ;;  %p563_p5 = pnand %p562_p4, %p556_p1 }
  0x33   :  { %449 = vmatprep.subr.bf16.mxu0 %v584_v0 }
  0x35   :  { %434 = vmatpush3.bf16.msra.mxu1 %v478_v8 }
  0x36   :  { %435 = vmatprep.subr.bf16.mxu1 %v584_v0  ;;  %450 = vmatpush3.bf16.msra.mxu0 %v484_v14 }
  0x37   :  { %451 = vmatprep.subr.bf16.mxu0 %v584_v0 }
  0x39   :  { %436 = vmatpush3.bf16.msra.mxu1 %v479_v9 }
  0x3a   :  { %437 = vmatprep.subr.bf16.mxu1 %v584_v0  ;;  %452 = vmatpush3.bf16.msra.mxu0 %v485_v15 }
  0x3b   :  { %453 = vmatprep.subr.bf16.mxu0 %v584_v0 }
  0x3d   :  { %438 = vmatpush3.bf16.msra.mxu1 %v480_v10 }
  0x3e   :  { %439 = vmatprep.subr.bf16.mxu1 %v584_v0  ;;  %454 = vmatpush3.bf16.msra.mxu0 %v486_v24 }
  0x3f   :  { %455 = vmatprep.subr.bf16.mxu0 %v584_v0 }
  0x41   :  { %440 = vmatpush3.bf16.msra.mxu1 %v481_v11 }
  0x42   :  { %441 = vmatprep.subr.bf16.mxu1 %v584_v0  ;;  %456 = vmatpush3.bf16.msra.mxu0 %v487_v25 }
  0x43   :  { %457 = vmatprep.subr.bf16.mxu0 %v584_v0 }
  0x45   :  { %442 = vmatpush3.bf16.msra.mxu1 %v482_v12 }
  0x46   :  { %458 = vmatpush3.bf16.msra.mxu0 %v488_v26 }
  0x47   :  { %459 = vmatprep.subr.bf16.mxu0 %v584_v0 }
  0x4a   :  { %460 = vmatpush3.bf16.msra.mxu0 %v489_v27 }
  0x4b   :  { %461 = vmatprep.subr.bf16.mxu0 %v584_v0 }
  0x4e   :  { %462 = vmatpush3.bf16.msra.mxu0 %v490_v28 }
  0xf0   :  { %v160_v17 = vpop.f32.mrf.mxu0 }
  0xf1   :  { %v161_v18 = vadd.f32 %v376_v16, %v160_v17 }
  0xf2   :  { %v425_v19 = vpop.f32.mrf.mxu0 }
  0xf3   :  { %491 = vtanh.f32 %v161_v18 }
  0xf4   :  { %v163_v20 = vpop.f32.mrf.mxu0 }
  0xf6   :  { %v426_v21 = vpop.f32.mrf.mxu0 }
 0x100   :  { %v492_v22 = vpop.eup %491 }
 0x101   :  { %v167_v23 = vpack.c.bf16 %v492_v22, %v492_v22 }
 0x103   :  { %444 = vmatmul.mubr.bf16.vlgmr.msra.gmra.mxu1 %v167_v23 }
 0x1c3   :  { %v256_v30 = vpop.f32.mrf.mxu1 }
 0x1c4   :  { %v257_v31 = vadd.f32 %v380_v29, %v256_v30 }
 0x1c5   :  { %v445_v32 = vpop.f32.mrf.mxu1 }
 0x1c6   :  { %493 = vtanh.f32 %v257_v31 }
 0x1c7   :  { %v259_v33 = vpop.f32.mrf.mxu1 }
 0x1c9   :  { %v446_v34 = vpop.f32.mrf.mxu1 }
 0x1d3   :  { %v494_v35 = vpop.eup %493 }
 0x1d4   :  { %v263_v36 = vpack.c.bf16 %v494_v35, %v494_v35 }
 0x1d6   :  { %464 = vmatmul.mubr.bf16.vlgmr.msra.gmra.mxu0 %v263_v36 }
 0x296   :  { %v352_v38 = vpop.f32.mrf.mxu0 }
 0x297   :  { %v353_v39 = vadd.f32 %v389_v37, %v352_v38 }
 0x298   :  { %v465_v40 = vpop.f32.mrf.mxu0 }
 0x299   :  { %359 = vst.msk [vmem:[#allocation8] sm:$0xff] %vm358_vm2, %v353_v39 }
 0x29a   :  { %v355_v41 = vpop.f32.mrf.mxu0 }
 0x29b   :  { %566 = shalt.err (!%p563_p5)
}
 0x29c   :  { %369 = dma.vmem_to_hbm [thread:$0]  %s367_s24, 128, %s727_s7, [#allocation4]   ;;  %v466_v42 = vpop.f32.mrf.mxu0 }
 0x29d   :  { %579 = dma.done.wait [#allocation4], 128  }
 0x29e   :  { %580 = vsyncadd [#allocation4], 4294967168 }
 0x29f   :  { %373 = vsyncpa [#allocation3], 1 }
 0x2a0   :  { %374 = vsyncpa [#allocation6], 1 }
 0x2a1   :  { %375 = vsyncpa [#allocation4], 1 }

</bundles_post_ra>
